<compile_context>
chip_gen: v5e
topology: v5e:2x2
jax: 0.10.0
libtpu: 0.0.40
codegen_flags: <defaults>
</compile_context>

<pallas_src>
import functools

import jax
import jax.numpy as jnp
from jax.experimental import pallas as pl
from jax.experimental.pallas import tpu as pltpu

_LANE = 128      # vreg lane width
_SUBLANE = 16    # bf16 sublane packing

# Single-buffer constant-index weight blocks when the JAX build supports it.
_HAS_BUFFERED = hasattr(pl, "Buffered")


def _round_up(a, m):
    return ((a + m - 1) // m) * m


def _pad_to(arr, shape, value=0.0):
    pads = [(0, t - s) for s, t in zip(arr.shape, shape)]
    if all(p == (0, 0) for p in pads):
        return arr
    return jnp.pad(arr, pads, constant_values=value)


def _default_block_b(batch, row_bytes_f32):
    """Largest batch tile that keeps per-step tiles ~<=8 MiB, capped at 1024 rows.

    Small batches collapse to a single grid step (per-step overhead dominates);
    large batches get >=512-row steps so a multi-step 'parallel' grid gives each
    v7x TensorCore non-trivial work.
    """
    cap = max(_SUBLANE, min(1024, (8 << 20) // max(row_bytes_f32, 1)))
    cap = max((cap // _SUBLANE) * _SUBLANE, _SUBLANE)
    return min(_round_up(batch, _SUBLANE), cap)


def _mlp_kernel(x_ref, w1_ref, b1_ref, w2_ref, b2_ref, w3_ref, b3_ref, o_ref):
    # In-kernel bf16 cast of x (VPU, hidden under MXU work); f32 accumulation.
    x = x_ref[...].astype(jnp.bfloat16)
    h1 = jnp.dot(x, w1_ref[...], preferred_element_type=jnp.float32)
    h1 = jnp.maximum(h1 + b1_ref[...], 0.0)
    h2 = jnp.dot(h1.astype(jnp.bfloat16), w2_ref[...], preferred_element_type=jnp.float32)
    h2 = jnp.maximum(h2 + b2_ref[...], 0.0)
    logits = jnp.dot(h2.astype(jnp.bfloat16), w3_ref[...], preferred_element_type=jnp.float32)
    logits = logits + b3_ref[...]
    # Softmax over the (now 128-lane padded) class axis.  Padded classes carry a
    # -1e30 bias -> exp underflows to exactly 0, so no mask is needed.
    m = jnp.max(logits, axis=-1, keepdims=True)
    e = jnp.exp(logits - m)
    denom = jnp.sum(e, axis=-1, keepdims=True)
    # Exact division so rows sum to 1 like nn.Softmax.  (pl.reciprocal(denom,
    # approx=True) is ~free on the EUP if ~1e-3 normalization error is OK.)
    o_ref[...] = (e / denom).astype(o_ref.dtype)


def prepare_mlp_params(w1, b1, w2, b2, w3, b3):
    """Pad feature dims to multiples of 128 and cast weights to bf16, ONCE.

    Hidden/input pads are zeros (ReLU(0)=0 keeps the math identical); the class
    pad of b3 is -1e30 so softmax of padded columns is exactly 0.
    Returns (padded params tuple, (in_dim, hidden, out_dim)).
    """
    in_dim, hidden = w1.shape
    out_dim = w3.shape[1]
    in_p = _round_up(in_dim, _LANE)
    h_p = _round_up(hidden, _LANE)
    out_p = _round_up(out_dim, _LANE)

    w1p = _pad_to(w1, (in_p, h_p)).astype(jnp.bfloat16)
    b1p = _pad_to(jnp.reshape(b1, (1, -1)), (1, h_p)).astype(jnp.float32)
    w2p = _pad_to(w2, (h_p, h_p)).astype(jnp.bfloat16)
    b2p = _pad_to(jnp.reshape(b2, (1, -1)), (1, h_p)).astype(jnp.float32)
    w3p = _pad_to(w3, (h_p, out_p)).astype(jnp.bfloat16)
    b3p = _pad_to(jnp.reshape(b3, (1, -1)), (1, out_p), value=-1e30).astype(jnp.float32)
    return (w1p, b1p, w2p, b2p, w3p, b3p), (in_dim, hidden, out_dim)


@functools.partial(jax.jit, static_argnames=("out_dim", "block_b"))
def mlp_forward_prepared(x, w1p, b1p, w2p, b2p, w3p, b3p, *, out_dim, block_b=None):
    B, in_dim = x.shape
    in_p, h_p = w1p.shape
    out_p = w3p.shape[1]

    # Zero-pad x feature columns to the padded input width (f32; cast in-kernel).
    if in_p != in_dim:
        x = jnp.pad(x, ((0, 0), (0, in_p - in_dim)))

    # Batch tiling: pick the tile, then pad the batch so every grid step sees
    # full, in-range rows (padded rows produce finite softmax; sliced off below).
    row_bytes_f32 = (2 * in_p + 2 * h_p + 2 * out_p) * 4
    if block_b is None:
        block_b = _default_block_b(B, row_bytes_f32)
    block_b = max(_SUBLANE, _round_up(block_b, _SUBLANE))
    b_pad = _round_up(B, block_b)
    if b_pad != B:
        x = jnp.pad(x, ((0, b_pad - B), (0, 0)))
    grid = (b_pad // block_b,)

    # Weights/biases have a constant block index -> single-buffer them when the
    # build supports it (double-buffering them is pure VMEM waste, esp. on v7x).
    w_mode = pl.Buffered(1) if _HAS_BUFFERED else None
    w_buffers = 1 if _HAS_BUFFERED else 2

    # VMEM budget: resident weights + double-buffered x/out tiles + f32
    # intermediates, with margin; clamp to 48 MiB so v7x (64 MiB physical) keeps
    # headroom for compiler scratch.
    weight_bytes = (in_p * h_p + h_p * h_p + h_p * out_p) * 2 + (2 * h_p + out_p) * 4
    tile_bytes = 2 * block_b * (in_p + out_p) * 4
    interm_bytes = 2 * block_b * h_p * 4
    needed = weight_bytes * w_buffers + tile_bytes + interm_bytes
    vmem_limit = int(min(max(2 * needed + (4 << 20), 16 << 20), 48 << 20))

    flops = 2 * b_pad * (in_p * h_p + h_p * h_p + h_p * out_p)
    bytes_accessed = (
        b_pad * in_p * 4                                      # x (f32, padded)
        + (in_p * h_p + h_p * h_p + h_p * out_p) * 2          # weights (bf16, padded)
        + (2 * h_p + out_p) * 4                               # biases (f32, padded)
        + b_pad * out_p * 4                                   # output (f32, padded)
    )

    out = pl.pallas_call(
        _mlp_kernel,
        out_shape=jax.ShapeDtypeStruct((b_pad, out_p), jnp.float32),
        grid_spec=pltpu.PrefetchScalarGridSpec(
            num_scalar_prefetch=0,
            grid=grid,
            in_specs=[
                pl.BlockSpec((block_b, in_p), lambda i: (i, 0)),
                pl.BlockSpec((in_p, h_p), lambda i: (0, 0), pipeline_mode=w_mode),
                pl.BlockSpec((1, h_p), lambda i: (0, 0), pipeline_mode=w_mode),
                pl.BlockSpec((h_p, h_p), lambda i: (0, 0), pipeline_mode=w_mode),
                pl.BlockSpec((1, h_p), lambda i: (0, 0), pipeline_mode=w_mode),
                pl.BlockSpec((h_p, out_p), lambda i: (0, 0), pipeline_mode=w_mode),
                pl.BlockSpec((1, out_p), lambda i: (0, 0), pipeline_mode=w_mode),
            ],
            out_specs=pl.BlockSpec((block_b, out_p), lambda i: (i, 0)),
        ),
        compiler_params=pltpu.CompilerParams(
            dimension_semantics=("parallel",),
            vmem_limit_bytes=vmem_limit,
        ),
        cost_estimate=pl.CostEstimate(
            flops=flops,
            transcendentals=b_pad * out_p,
            bytes_accessed=bytes_accessed,
        ),
        # TODO(synk): for hidden large enough that bf16 weights approach ~40 MiB
        # (v7x ceiling), add a hidden-dim grid axis with an f32 VMEM accumulator
        # instead of keeping the full (hidden, hidden) block resident.
    )(x, w1p, b1p, w2p, b2p, w3p, b3p)

    return out[:B, :out_dim]


def mlp_forward(x, w1, b1, w2, b2, w3, b3, *, block_b=None):
    """Convenience one-shot wrapper.

    For repeated calls with the same weights, call prepare_mlp_params once and
    then mlp_forward_prepared directly (avoids re-padding / re-casting weights).
    """
    params, (_, _, out_dim) = prepare_mlp_params(w1, b1, w2, b2, w3, b3)
    return mlp_forward_prepared(x, *params, out_dim=out_dim, block_b=block_b)


def init_linear_params(key, in_features, out_features):
    """Deterministic init mimicking nn.Linear default (uniform +/- 1/sqrt(fan_in)).

    Weight is (in_features, out_features) (transposed vs PyTorch) and bias is
    (1, out_features) so everything stays 2-D for TPU lanes.
    """
    kw, kb = jax.random.split(key)
    bound = 1.0 / jnp.sqrt(jnp.float32(in_features))
    w = jax.random.uniform(kw, (in_features, out_features), jnp.float32, -bound, bound)
    b = jax.random.uniform(kb, (1, out_features), jnp.float32, -bound, bound)
    return w, b


if __name__ == "__main__":
    # Small shapes consistent with the module: (batch, input_size) -> softmax over classes.
    batch, input_size, hidden_size, output_size = 32, 16, 32, 8

    key = jax.random.PRNGKey(0)
    kx, k1, k2, k3 = jax.random.split(key, 4)

    x = jax.random.normal(kx, (batch, input_size), jnp.float32)
    w1, b1 = init_linear_params(k1, input_size, hidden_size)
    w2, b2 = init_linear_params(k2, hidden_size, hidden_size)
    w3, b3 = init_linear_params(k3, hidden_size, output_size)

    # Prepare (pad + bf16-cast) weights once, then run the kernel.
    params, (_, _, out_dim) = prepare_mlp_params(w1, b1, w2, b2, w3, b3)
    out = jax.block_until_ready(mlp_forward_prepared(x, *params, out_dim=out_dim))

    # Reference 1: same bf16 casts as the kernel (tight comparison).
    xb, w1b, w2b, w3b = (a.astype(jnp.bfloat16) for a in (x, w1, w2, w3))
    h1 = jnp.maximum(jnp.dot(xb, w1b, preferred_element_type=jnp.float32) + b1, 0.0)
    h2 = jnp.maximum(jnp.dot(h1.astype(jnp.bfloat16), w2b, preferred_element_type=jnp.float32) + b2, 0.0)
    ref_bf16 = jax.nn.softmax(
        jnp.dot(h2.astype(jnp.bfloat16), w3b, preferred_element_type=jnp.float32) + b3, axis=1)

    # Reference 2: full-f32 semantics of the PyTorch module (loose sanity check).
    h1f = jnp.maximum(x @ w1 + b1, 0.0)
    h2f = jnp.maximum(h1f @ w2 + b2, 0.0)
    ref_f32 = jax.nn.softmax(h2f @ w3 + b3, axis=1)

    assert out.shape == (batch, output_size)
    assert jnp.allclose(out, ref_bf16, atol=2e-3, rtol=2e-3), "mismatch vs bf16-matched reference"
    assert jnp.allclose(out, ref_f32, atol=5e-2, rtol=5e-2), "mismatch vs f32 reference"
    assert jnp.allclose(jnp.sum(out, axis=1), 1.0, atol=1e-3), "softmax rows must sum to 1"

    print("KERNEL_OK")
</pallas_src>

<mosaic_0001>
module attributes {stable_mosaic.version = 11 : i64} {
  func.func @_mlp_kernel(%arg0: i32, %arg1: memref<32x128xf32, #tpu.memory_space<vmem>>, %arg2: memref<128x128xbf16, #tpu.memory_space<vmem>>, %arg3: memref<1x128xf32, #tpu.memory_space<vmem>>, %arg4: memref<128x128xbf16, #tpu.memory_space<vmem>>, %arg5: memref<1x128xf32, #tpu.memory_space<vmem>>, %arg6: memref<128x128xbf16, #tpu.memory_space<vmem>>, %arg7: memref<1x128xf32, #tpu.memory_space<vmem>>, %arg8: memref<32x128xf32, #tpu.memory_space<vmem>>) attributes {dimension_semantics = [#tpu.dimension_semantics<parallel>], iteration_bounds = array<i64: 1>, scalar_prefetch = 0 : i64, scratch_operands = 0 : i64, tpu.core_type = #tpu.core_type<tc>, window_params = [{transform_indices = @transform_0, window_bounds = array<i64: 32, 128>}, {pipeline_mode = #tpu.pipeline_mode<synchronous>, transform_indices = @transform_1, window_bounds = array<i64: 128, 128>}, {pipeline_mode = #tpu.pipeline_mode<synchronous>, transform_indices = @transform_2, window_bounds = array<i64: 1, 128>}, {pipeline_mode = #tpu.pipeline_mode<synchronous>, transform_indices = @transform_3, window_bounds = array<i64: 128, 128>}, {pipeline_mode = #tpu.pipeline_mode<synchronous>, transform_indices = @transform_4, window_bounds = array<i64: 1, 128>}, {pipeline_mode = #tpu.pipeline_mode<synchronous>, transform_indices = @transform_5, window_bounds = array<i64: 128, 128>}, {pipeline_mode = #tpu.pipeline_mode<synchronous>, transform_indices = @transform_6, window_bounds = array<i64: 1, 128>}, {transform_indices = @transform_7, window_bounds = array<i64: 32, 128>}]} {
    %c0 = arith.constant 0 : index
    %c0_0 = arith.constant 0 : index
    %0 = vector.load %arg1[%c0, %c0_0] : memref<32x128xf32, #tpu.memory_space<vmem>>, vector<32x128xf32>
    %1 = arith.truncf %0 : vector<32x128xf32> to vector<32x128xbf16>
    %c0_1 = arith.constant 0 : index
    %c0_2 = arith.constant 0 : index
    %2 = vector.load %arg2[%c0_1, %c0_2] : memref<128x128xbf16, #tpu.memory_space<vmem>>, vector<128x128xbf16>
    %cst = arith.constant dense<0.000000e+00> : vector<32x128xf32>
    %3 = tpu.matmul %1, %2, %cst {dimension_numbers = #tpu.dot_dimension_numbers<[1], [0], [0], [1], [0, 0, 1, 1], [], []>} : vector<32x128xbf16>, vector<128x128xbf16>, vector<32x128xf32> -> vector<32x128xf32>
    %c0_3 = arith.constant 0 : index
    %c0_4 = arith.constant 0 : index
    %4 = vector.load %arg3[%c0_3, %c0_4] : memref<1x128xf32, #tpu.memory_space<vmem>>, vector<1x128xf32>
    %5 = vector.broadcast %4 : vector<1x128xf32> to vector<32x128xf32>
    %6 = arith.addf %3, %5 : vector<32x128xf32>
    %cst_5 = arith.constant 0.000000e+00 : f32
    %7 = vector.broadcast %cst_5 : f32 to vector<32x128xf32>
    %8 = arith.maximumf %6, %7 : vector<32x128xf32>
    %9 = arith.truncf %8 : vector<32x128xf32> to vector<32x128xbf16>
    %c0_6 = arith.constant 0 : index
    %c0_7 = arith.constant 0 : index
    %10 = vector.load %arg4[%c0_6, %c0_7] : memref<128x128xbf16, #tpu.memory_space<vmem>>, vector<128x128xbf16>
    %cst_8 = arith.constant dense<0.000000e+00> : vector<32x128xf32>
    %11 = tpu.matmul %9, %10, %cst_8 {dimension_numbers = #tpu.dot_dimension_numbers<[1], [0], [0], [1], [0, 0, 1, 1], [], []>} : vector<32x128xbf16>, vector<128x128xbf16>, vector<32x128xf32> -> vector<32x128xf32>
    %c0_9 = arith.constant 0 : index
    %c0_10 = arith.constant 0 : index
    %12 = vector.load %arg5[%c0_9, %c0_10] : memref<1x128xf32, #tpu.memory_space<vmem>>, vector<1x128xf32>
    %13 = vector.broadcast %12 : vector<1x128xf32> to vector<32x128xf32>
    %14 = arith.addf %11, %13 : vector<32x128xf32>
    %cst_11 = arith.constant 0.000000e+00 : f32
    %15 = vector.broadcast %cst_11 : f32 to vector<32x128xf32>
    %16 = arith.maximumf %14, %15 : vector<32x128xf32>
    %17 = arith.truncf %16 : vector<32x128xf32> to vector<32x128xbf16>
    %c0_12 = arith.constant 0 : index
    %c0_13 = arith.constant 0 : index
    %18 = vector.load %arg6[%c0_12, %c0_13] : memref<128x128xbf16, #tpu.memory_space<vmem>>, vector<128x128xbf16>
    %cst_14 = arith.constant dense<0.000000e+00> : vector<32x128xf32>
    %19 = tpu.matmul %17, %18, %cst_14 {dimension_numbers = #tpu.dot_dimension_numbers<[1], [0], [0], [1], [0, 0, 1, 1], [], []>} : vector<32x128xbf16>, vector<128x128xbf16>, vector<32x128xf32> -> vector<32x128xf32>
    %c0_15 = arith.constant 0 : index
    %c0_16 = arith.constant 0 : index
    %20 = vector.load %arg7[%c0_15, %c0_16] : memref<1x128xf32, #tpu.memory_space<vmem>>, vector<1x128xf32>
    %21 = vector.broadcast %20 : vector<1x128xf32> to vector<32x128xf32>
    %22 = arith.addf %19, %21 : vector<32x128xf32>
    %cst_17 = arith.constant dense<0xFF800000> : vector<32xf32>
    %23 = vector.multi_reduction <maximumf>, %22, %cst_17 [1] : vector<32x128xf32> to vector<32xf32>
    %24 = vector.shape_cast %23 : vector<32xf32> to vector<32x1xf32>
    %25 = vector.broadcast %24 : vector<32x1xf32> to vector<32x128xf32>
    %26 = arith.subf %22, %25 : vector<32x128xf32>
    %27 = math.exp %26 : vector<32x128xf32>
    %cst_18 = arith.constant dense<0.000000e+00> : vector<32xf32>
    %28 = vector.multi_reduction <add>, %27, %cst_18 [1] : vector<32x128xf32> to vector<32xf32>
    %29 = vector.shape_cast %28 : vector<32xf32> to vector<32x1xf32>
    %30 = vector.broadcast %29 : vector<32x1xf32> to vector<32x128xf32>
    %31 = arith.divf %27, %30 : vector<32x128xf32>
    %c0_19 = arith.constant 0 : index
    %c0_20 = arith.constant 0 : index
    %32 = vector.load %arg8[%c0_19, %c0_20] : memref<32x128xf32, #tpu.memory_space<vmem>>, vector<32x128xf32>
    tpu.vector_store %arg8[%c0_19, %c0_20], %31 {strides = array<i32>} : memref<32x128xf32, #tpu.memory_space<vmem>>, vector<32x128xf32>,
    return
  }
  func.func @transform_0(%arg0: i32) -> (i32, i32) {
    %c0_i32 = arith.constant 0 : i32
    %c0_i32_0 = arith.constant 0 : i32
    return %arg0, %c0_i32 : i32, i32
  }
  func.func @transform_1(%arg0: i32) -> (i32, i32) {
    %c0_i32 = arith.constant 0 : i32
    %c0_i32_0 = arith.constant 0 : i32
    %c0_i32_1 = arith.constant 0 : i32
    return %c0_i32, %c0_i32_0 : i32, i32
  }
  func.func @transform_2(%arg0: i32) -> (i32, i32) {
    %c0_i32 = arith.constant 0 : i32
    %c0_i32_0 = arith.constant 0 : i32
    %c0_i32_1 = arith.constant 0 : i32
    return %c0_i32, %c0_i32_0 : i32, i32
  }
  func.func @transform_3(%arg0: i32) -> (i32, i32) {
    %c0_i32 = arith.constant 0 : i32
    %c0_i32_0 = arith.constant 0 : i32
    %c0_i32_1 = arith.constant 0 : i32
    return %c0_i32, %c0_i32_0 : i32, i32
  }
  func.func @transform_4(%arg0: i32) -> (i32, i32) {
    %c0_i32 = arith.constant 0 : i32
    %c0_i32_0 = arith.constant 0 : i32
    %c0_i32_1 = arith.constant 0 : i32
    return %c0_i32, %c0_i32_0 : i32, i32
  }
  func.func @transform_5(%arg0: i32) -> (i32, i32) {
    %c0_i32 = arith.constant 0 : i32
    %c0_i32_0 = arith.constant 0 : i32
    %c0_i32_1 = arith.constant 0 : i32
    return %c0_i32, %c0_i32_0 : i32, i32
  }
  func.func @transform_6(%arg0: i32) -> (i32, i32) {
    %c0_i32 = arith.constant 0 : i32
    %c0_i32_0 = arith.constant 0 : i32
    %c0_i32_1 = arith.constant 0 : i32
    return %c0_i32, %c0_i32_0 : i32, i32
  }
  func.func @transform_7(%arg0: i32) -> (i32, i32) {
    %c0_i32 = arith.constant 0 : i32
    %c0_i32_0 = arith.constant 0 : i32
    return %arg0, %c0_i32 : i32, i32
  }
}

</mosaic_0001>

<bundles_post_ra>
// kernel: mlp_forward_prepared.1
= control target key start
LH: loop header
LB: loop body
LE: loop exit
PB: predicated region body
PF: predicated region fallthrough
CT: control target
= control target key end

     0   :  { %12 = vsyncpa [#allocation3], 0  ;;  %s753_s0 = inlined_call_operand.vmem [shape: f32[32,128], index: 0, kind: input, shape index: {}]   ;;  %s754_s1 = inlined_call_operand.vmem [shape: bf16[128,128], index: 1, kind: input, shape index: {}]   ;;  %s755_s2 = inlined_call_operand.vmem [shape: f32[1,128], index: 2, kind: input, shape index: {}]   ;;  %s756_s3 = inlined_call_operand.hbm [shape: bf16[128,128], index: 3, kind: input, shape index: {}]   ;;  %s757_s4 = inlined_call_operand.vmem [shape: f32[1,128], index: 4, kind: input, shape index: {}]   ;;  %s758_s5 = inlined_call_operand.hbm [shape: bf16[128,128], index: 5, kind: input, shape index: {}]   ;;  %s759_s6 = inlined_call_operand.vmem [shape: f32[1,128], index: 6, kind: input, shape index: {}]   ;;  %s760_s7 = inlined_call_operand.vmem [shape: f32[32,128], index: 7, kind: output, shape index: {}]  }
   0x1   :  { %s24_s26 = sshll.u32 %s756_s3, 4  ;;  %s25_s26 = int_to_ptr.hbm [resolvable:$true] %s24_s26 }
   0x2   :  { %13 = vsyncpa [#allocation5], 0  ;;  %s638_s27 = smov [#allocation2]   ;;  %s39_s8 = sshll.u32 %s758_s5, 4  ;;  %s40_s8 = int_to_ptr.hbm [resolvable:$true] %s39_s8 }
   0x3   :  { %s26_s28 = sshll.u32 %s638_s27, 4  ;;  %s639_s9 = smov 64   ;;  %s27_s28 = int_to_ptr.vmem [resolvable:$true] %s26_s28 }
   0x4   :  { %s640_s10 = smov 4   ;;  %s641_s11 = smov [#allocation4]  }
   0x5   :  { %32 = dma.hbm_to_vmem [thread:$0]  %s25_s26, 1024, %s27_s28, [#allocation3], %s639_s9, %s639_s9, %s640_s10  }
   0x6   :  { %s41_s12 = sshll.u32 %s641_s11, 4  ;;  %s42_s12 = int_to_ptr.vmem [resolvable:$true] %s41_s12 }
   0x7   :  { %47 = dma.hbm_to_vmem [thread:$0]  %s40_s8, 1024, %s42_s12, [#allocation5], %s639_s9, %s639_s9, %s640_s10  }
   0x8   :  { %634 = dma.done.wait [#allocation3], 1024  }
   0x9   :  { %635 = vsyncadd [#allocation3], 4294966272 }
   0xa   :  { %636 = dma.done.wait [#allocation5], 1024  }
   0xb   :  { %637 = vsyncadd [#allocation5], 4294966272  ;;  %v538_v0 = vld [vmem:[%s754_s1 + $0x38] sm:$0xff]  ;;  %v537_v1 = vld [vmem:[%s754_s1 + $0x30] sm:$0xff] }
   0xc   :  { %132 = vmatpush.bf16.msra.mxu0 %v538_v0  ;;  %555 = vmatpush.bf16.msra.mxu3 %v538_v0  ;;  %v546_v2 = vld [vmem:[#allocation2 + $0x38] sm:$0xff]  ;;  %v536_v3 = vld [vmem:[%s754_s1 + $0x28] sm:$0xff]  ;;  %v545_v4 = vld [vmem:[#allocation2 + $0x30] sm:$0xff] }
   0xd   :  { %225 = vmatpush.bf16.msra.mxu1 %v546_v2  ;;  %v535_v5 = vld [vmem:[%s754_s1 + $0x20] sm:$0xff]  ;;  %v544_v6 = vld [vmem:[#allocation2 + $0x28] sm:$0xff]  ;;  %v534_v7 = vld [vmem:[%s754_s1 + $0x18] sm:$0xff] }
   0xe   :  { %v543_v8 = vld [vmem:[#allocation2 + $0x20] sm:$0xff]  ;;  %v533_v9 = vld [vmem:[%s754_s1 + $0x10] sm:$0xff]  ;;  %v532_v10 = vld [vmem:[%s754_s1 + $0x8] sm:$0xff] }
   0xf   :  { %v531_v11 = vld [vmem:[%s754_s1] sm:$0xff]  ;;  %v59_v13 = vld [vmem:[%s753_s0 + $0x8] sm:$0xff]  ;;  %v60_v14 = vld [vmem:[%s753_s0 + $0x10] sm:$0xff] }
  0x10   :  { %133 = vmatpush.bf16.msra.mxu0 %v537_v1  ;;  %556 = vmatpush.bf16.msra.mxu3 %v537_v1  ;;  %v58_v12 = vld [vmem:[%s753_s0] sm:$0xff]  ;;  %v61_v15 = vld [vmem:[%s753_s0 + $0x18] sm:$0xff]  ;;  %v541_v19 = vld [vmem:[#allocation2 + $0x10] sm:$0xff] }
  0x11   :  { %226 = vmatpush.bf16.msra.mxu1 %v545_v4  ;;  %v62_v16 = vpack.c.bf16 %v59_v13, %v58_v12  ;;  %v63_v17 = vpack.c.bf16 %v61_v15, %v60_v14  ;;  %v542_v18 = vld [vmem:[#allocation2 + $0x18] sm:$0xff]  ;;  %v540_v20 = vld [vmem:[#allocation2 + $0x8] sm:$0xff]  ;;  %v539_v21 = vld [vmem:[#allocation2] sm:$0xff] }
  0x12   :  { %v554_v22 = vld [vmem:[#allocation4 + $0x38] sm:$0xff]  ;;  %v553_v24 = vld [vmem:[#allocation4 + $0x30] sm:$0xff]  ;;  %v567_v25 = vld [vmem:[%s755_s2] ss:$0 sm:$0xff] }
  0x13   :  { %318 = vmatpush.bf16.msra.mxu2 %v554_v22  ;;  %v552_v26 = vld [vmem:[#allocation4 + $0x28] sm:$0xff]  ;;  %v551_v31 = vld [vmem:[#allocation4 + $0x20] sm:$0xff]  ;;  %v550_v41 = vld [vmem:[#allocation4 + $0x18] sm:$0xff] }
  0x14   :  { %134 = vmatpush.bf16.msra.mxu0 %v536_v3  ;;  %557 = vmatpush.bf16.msra.mxu3 %v536_v3  ;;  %v549_v42 = vld [vmem:[#allocation4 + $0x10] sm:$0xff]  ;;  %v548_v43 = vld [vmem:[#allocation4 + $0x8] sm:$0xff]  ;;  %v547_v44 = vld [vmem:[#allocation4] sm:$0xff] }
  0x15   :  { %227 = vmatpush.bf16.msra.mxu1 %v544_v6  ;;  %v568_v46 = vld [vmem:[%s757_s4] ss:$0 sm:$0xff] }
  0x16   :  { %v569_v60 = vld [vmem:[%s759_s6] ss:$0 sm:$0xff] }
  0x17   :  { %319 = vmatpush.bf16.msra.mxu2 %v553_v24 }
  0x18   :  { %135 = vmatpush.bf16.msra.mxu0 %v535_v5  ;;  %558 = vmatpush.bf16.msra.mxu3 %v535_v5 }
  0x19   :  { %228 = vmatpush.bf16.msra.mxu1 %v543_v8 }
  0x1b   :  { %320 = vmatpush.bf16.msra.mxu2 %v552_v26 }
  0x1c   :  { %136 = vmatpush.bf16.msra.mxu0 %v534_v7  ;;  %559 = vmatpush.bf16.msra.mxu3 %v534_v7 }
  0x1d   :  { %229 = vmatpush.bf16.msra.mxu1 %v542_v18 }
  0x1f   :  { %321 = vmatpush.bf16.msra.mxu2 %v551_v31 }
  0x20   :  { %137 = vmatpush.bf16.msra.mxu0 %v533_v9  ;;  %560 = vmatpush.bf16.msra.mxu3 %v533_v9 }
  0x21   :  { %230 = vmatpush.bf16.msra.mxu1 %v541_v19 }
  0x23   :  { %322 = vmatpush.bf16.msra.mxu2 %v550_v41 }
  0x24   :  { %138 = vmatpush.bf16.msra.mxu0 %v532_v10  ;;  %561 = vmatpush.bf16.msra.mxu3 %v532_v10 }
  0x25   :  { %231 = vmatpush.bf16.msra.mxu1 %v540_v20 }
  0x27   :  { %323 = vmatpush.bf16.msra.mxu2 %v549_v42 }
  0x28   :  { %139 = vmatpush.bf16.msra.mxu0 %v531_v11  ;;  %562 = vmatpush.bf16.msra.mxu3 %v531_v11 }
  0x29   :  { %232 = vmatpush.bf16.msra.mxu1 %v539_v21 }
  0x2b   :  { %140 = vmatmul.bf16.vlgmr.msra.gmra.mxu0 %v62_v16  ;;  %145 = vmatmul.bf16.vlgmr.msra.gmra.mxu3 %v63_v17 }
  0x2c   :  { %324 = vmatpush.bf16.msra.mxu2 %v548_v43 }
  0x30   :  { %325 = vmatpush.bf16.msra.mxu2 %v547_v44 }
  0xa8   :  { %v141_v23 = vpop.f32.mrf.mxu0 }
  0xa9   :  { %v142_v27 = vadd.f32 %v567_v25, %v141_v23 }
  0xab   :  { %v151_v32 = vmax.f32 %v142_v27, 0.0 }
  0xae   :  { %v146_v29 = vpop.f32.mrf.mxu3 }
  0xaf   :  { %v147_v36 = vadd.f32 %v567_v25, %v146_v29 }
  0xb0   :  { %v143_v28 = vpop.f32.mrf.mxu0 }
  0xb1   :  { %v144_v30 = vadd.f32 %v567_v25, %v143_v28  ;;  %v153_v38 = vmax.f32 %v147_v36, 0.0 }
  0xb3   :  { %v152_v33 = vmax.f32 %v144_v30, 0.0 }
  0xb5   :  { %v155_v34 = vpack.c.bf16 %v152_v33, %v151_v32 }
  0xb6   :  { %v148_v35 = vpop.f32.mrf.mxu3 }
  0xb7   :  { %233 = vmatmul.bf16.vlgmr.msra.gmra.mxu1 %v155_v34  ;;  %v149_v37 = vadd.f32 %v567_v25, %v148_v35 }
  0xb9   :  { %v154_v39 = vmax.f32 %v149_v37, 0.0 }
  0xbb   :  { %v156_v40 = vpack.c.bf16 %v154_v39, %v153_v38 }
  0xc7   :  { %238 = vmatmul.bf16.gmra.mxu1 %v156_v40 }
 0x134   :  { %v234_v45 = vpop.f32.mrf.mxu1 }
 0x135   :  { %v235_v47 = vadd.f32 %v568_v46, %v234_v45 }
 0x137   :  { %v244_v50 = vmax.f32 %v235_v47, 0.0 }
 0x13c   :  { %v236_v48 = vpop.f32.mrf.mxu1 }
 0x13d   :  { %v237_v49 = vadd.f32 %v568_v46, %v236_v48 }
 0x13f   :  { %v245_v51 = vmax.f32 %v237_v49, 0.0 }
 0x141   :  { %v248_v52 = vpack.c.bf16 %v245_v51, %v244_v50 }
 0x143   :  { %326 = vmatmul.bf16.vlgmr.msra.gmra.mxu2 %v248_v52 }
 0x144   :  { %v239_v53 = vpop.f32.mrf.mxu1 }
 0x145   :  { %v240_v54 = vadd.f32 %v568_v46, %v239_v53 }
 0x147   :  { %v246_v57 = vmax.f32 %v240_v54, 0.0 }
 0x14c   :  { %v241_v55 = vpop.f32.mrf.mxu1 }
 0x14d   :  { %v242_v56 = vadd.f32 %v568_v46, %v241_v55 }
 0x14f   :  { %v247_v58 = vmax.f32 %v242_v56, 0.0 }
 0x151   :  { %v249_v59 = vpack.c.bf16 %v247_v58, %v246_v57 }
 0x153   :  { %331 = vmatmul.bf16.gmra.mxu2 %v249_v59 }
 0x1c6   :  { %v327_v61 = vpop.f32.mrf.mxu2 }
 0x1c7   :  { %v328_v62 = vadd.f32 %v569_v60, %v327_v61 }
 0x1c9   :  { %337 = vmax.xlane.f32.xlu0 %v328_v62 }
 0x1ce   :  { %v329_v63 = vpop.f32.mrf.mxu2 }
 0x1cf   :  { %v330_v0 = vadd.f32 %v569_v60, %v329_v63 }
 0x1d1   :  { %339 = vmax.xlane.f32.xlu0 %v330_v0 }
 0x1d6   :  { %v332_v1 = vpop.f32.mrf.mxu2 }
 0x1d7   :  { %v333_v2 = vadd.f32 %v569_v60, %v332_v1 }
 0x1d9   :  { %341 = vmax.xlane.f32.xlu1 %v333_v2 }
 0x1de   :  { %v334_v3 = vpop.f32.mrf.mxu2 }
 0x1df   :  { %v335_v4 = vadd.f32 %v569_v60, %v334_v3 }
 0x1e1   :  { %343 = vmax.xlane.f32.xlu1 %v335_v4 }
 0x23c   :  { %v338_v5 = vpop.xlane.xlu0 %337 }
 0x23d   :  { %v345_v6 = vsub.f32 %v328_v62, %v338_v5 }
 0x23f   :  { %v349_v7 = vmul.f32 1.442695, %v345_v6 }
 0x241   :  { %570 = vpow2.f32 %v349_v7 }
 0x244   :  { %v340_v8 = vpop.xlane.xlu0 %339 }
 0x245   :  { %v346_v9 = vsub.f32 %v330_v0, %v340_v8 }
 0x247   :  { %v571_v10 = vpop.eup %570  ;;  %v351_v11 = vmul.f32 1.442695, %v346_v9 }
 0x248   :  { %357 = vadd.xlane.f32.xlu2 %v571_v10 }
 0x249   :  { %572 = vpow2.f32 %v351_v11 }
 0x24c   :  { %v342_v12 = vpop.xlane.xlu1 %341 }
 0x24d   :  { %v347_v13 = vsub.f32 %v333_v2, %v342_v12 }
 0x24f   :  { %v573_v14 = vpop.eup %572  ;;  %v353_v15 = vmul.f32 1.442695, %v347_v13 }
 0x250   :  { %359 = vadd.xlane.f32.xlu2 %v573_v14 }
 0x251   :  { %574 = vpow2.f32 %v353_v15 }
 0x254   :  { %v344_v16 = vpop.xlane.xlu1 %343 }
 0x255   :  { %v348_v17 = vsub.f32 %v335_v4, %v344_v16 }
 0x257   :  { %v733_v18 = vpop.eup %574  ;;  %v355_v19 = vmul.f32 1.442695, %v348_v17 }
 0x258   :  { %361 = vadd.xlane.f32.xlu0 %v733_v18 }
 0x259   :  { %576 = vpow2.f32 %v355_v19 }
 0x25f   :  { %v736_v20 = vpop.eup %576 }
 0x260   :  { %363 = vadd.xlane.f32.xlu1 %v736_v20 }
 0x2bb   :  { %v358_v21 = vpop.xlane.xlu2 %357 }
 0x2bc   :  { %578 = vrcp.f32 %v358_v21  ;;  %v376_v26 = vand.u32 2147483648, %v358_v21  ;;  %v374_v28 = vand.u32 2147483647, %v358_v21  ;;  %vm370_vm1 = vweird.f32 %v358_v21 }
 0x2be   :  { %v377_v31 = vor.u32 1.1754944e-38, %v376_v26  ;;  %vm375_vm3 = vcmp.eq.f32.partialorder %v374_v28, 8.507059e+37 }
 0x2c2   :  { %v579_v22 = vpop.eup %578 }
 0x2c3   :  { %v366_v23 = vmul.f32 %v579_v22, %v358_v21  ;;  %v360_v24 = vpop.xlane.xlu2 %359  ;;  %vm371_vm0 = vweird.f32 %v579_v22 }
 0x2c4   :  { %580 = vrcp.f32 %v360_v24  ;;  %vm372_vm2 = vmor %vm370_vm1, %vm371_vm0  ;;  %v391_v38 = vand.u32 2147483648, %v360_v24  ;;  %v389_v40 = vand.u32 2147483647, %v360_v24  ;;  %vm385_vm5 = vweird.f32 %v360_v24 }
 0x2c5   :  { %v367_v25 = vsub.f32 1.0, %v366_v23 }
 0x2c6   :  { %v392_v43 = vor.u32 1.1754944e-38, %v391_v38  ;;  %vm390_vm7 = vcmp.eq.f32.partialorder %v389_v40, 8.507059e+37 }
 0x2c7   :  { %v368_v27 = vmul.f32 %v579_v22, %v367_v25 }
 0x2c9   :  { %v369_v29 = vadd.f32 %v579_v22, %v368_v27 }
 0x2ca   :  { %v581_v30 = vpop.eup %580 }
 0x2cb   :  { %v373_v32 = vsel %vm372_vm2, %v579_v22, %v369_v29  ;;  %v381_v33 = vmul.f32 %v581_v30, %v360_v24  ;;  %v362_v34 = vpop.xlane.xlu0 %361  ;;  %vm386_vm4 = vweird.f32 %v581_v30 }
 0x2cc   :  { %v378_v35 = vsel %vm375_vm3, %v377_v31, %v373_v32  ;;  %582 = vrcp.f32 %v362_v34  ;;  %vm387_vm6 = vmor %vm385_vm5, %vm386_vm4  ;;  %v406_v50 = vand.u32 2147483648, %v362_v34  ;;  %v404_v52 = vand.u32 2147483647, %v362_v34 }
 0x2cd   :  { %v379_v36 = vmul.f32 %v571_v10, %v378_v35  ;;  %v382_v37 = vsub.f32 1.0, %v381_v33  ;;  %vm400_vm9 = vweird.f32 %v362_v34 }
 0x2ce   :  { %v407_v55 = vor.u32 1.1754944e-38, %v406_v50  ;;  %vm405_vm11 = vcmp.eq.f32.partialorder %v404_v52, 8.507059e+37 }
 0x2cf   :  { %425 = vst [vmem:[%s760_s7] sm:$0xff] %v379_v36  ;;  %v383_v39 = vmul.f32 %v581_v30, %v382_v37 }
 0x2d1   :  { %v384_v41 = vadd.f32 %v581_v30, %v383_v39 }
 0x2d2   :  { %v583_v42 = vpop.eup %582 }
 0x2d3   :  { %v388_v44 = vsel %vm387_vm6, %v581_v30, %v384_v41  ;;  %v396_v45 = vmul.f32 %v583_v42, %v362_v34  ;;  %v364_v46 = vpop.xlane.xlu1 %363  ;;  %vm401_vm8 = vweird.f32 %v583_v42 }
 0x2d4   :  { %v393_v47 = vsel %vm390_vm7, %v392_v43, %v388_v44  ;;  %584 = vrcp.f32 %v364_v46  ;;  %vm402_vm10 = vmor %vm400_vm9, %vm401_vm8  ;;  %v421_v61 = vand.u32 2147483648, %v364_v46  ;;  %v419_v63 = vand.u32 2147483647, %v364_v46 }
 0x2d5   :  { %v394_v48 = vmul.f32 %v573_v14, %v393_v47  ;;  %v397_v49 = vsub.f32 1.0, %v396_v45  ;;  %vm415_vm13 = vweird.f32 %v364_v46 }
 0x2d6   :  { %v422_v1 = vor.u32 1.1754944e-38, %v421_v61  ;;  %vm420_vm15 = vcmp.eq.f32.partialorder %v419_v63, 8.507059e+37 }
 0x2d7   :  { %426 = vst [vmem:[%s760_s7 + $0x8] sm:$0xff] %v394_v48  ;;  %v398_v51 = vmul.f32 %v583_v42, %v397_v49 }
 0x2d9   :  { %v399_v53 = vadd.f32 %v583_v42, %v398_v51 }
 0x2da   :  { %v585_v54 = vpop.eup %584 }
 0x2db   :  { %v403_v56 = vsel %vm402_vm10, %v583_v42, %v399_v53  ;;  %v411_v57 = vmul.f32 %v585_v54, %v364_v46  ;;  %vm416_vm12 = vweird.f32 %v585_v54 }
 0x2dc   :  { %v408_v58 = vsel %vm405_vm11, %v407_v55, %v403_v56  ;;  %vm417_vm14 = vmor %vm415_vm13, %vm416_vm12 }
 0x2dd   :  { %v409_v59 = vmul.f32 %v733_v18, %v408_v58  ;;  %v412_v60 = vsub.f32 1.0, %v411_v57 }
 0x2df   :  { %427 = vst [vmem:[%s760_s7 + $0x10] sm:$0xff] %v409_v59  ;;  %v413_v62 = vmul.f32 %v585_v54, %v412_v60 }
 0x2e1   :  { %v414_v0 = vadd.f32 %v585_v54, %v413_v62 }
 0x2e3   :  { %v418_v2 = vsel %vm417_vm14, %v585_v54, %v414_v0 }
 0x2e4   :  { %v423_v3 = vsel %vm420_vm15, %v422_v1, %v418_v2 }
 0x2e5   :  { %v424_v4 = vmul.f32 %v736_v20, %v423_v3 }
 0x2e7   :  { %428 = vst [vmem:[%s760_s7 + $0x18] sm:$0xff] %v424_v4 }
 0x2e8   :  { %433 = vsyncpa [#allocation3], 1 }
 0x2e9   :  { %434 = vsyncpa [#allocation5], 1 }

</bundles_post_ra>
